<compile_context>
chip_gen: v7x
topology: tpu7x:2x2x1
jax: 0.10.0
libtpu: 0.0.40
codegen_flags: <defaults>
</compile_context>

<pallas_src>
import math
import jax
import jax.numpy as jnp
import numpy as np
from jax import lax
from jax.experimental import pallas as pl
from jax.experimental.pallas import tpu as pltpu


def _round_up(x, m):
    return ((x + m - 1) // m) * m


def graph_node_feature_kernel(idx_ref, tbl_ref, out_ref):
    """One grid step.

    idx_ref: (tile_m, 3) int32 — pre-offset indices into the stacked vocab.
    tbl_ref: (V_pad, H_pad) f32 — stacked + zero-padded embedding table
             (resident across the whole grid).
    out_ref: (tile_m, H_pad) f32 — lane-dense output tile.
    """
    idx = idx_ref[...]                                    # (tile_m, 3)
    tile_m = idx.shape[0]
    v_pad = tbl_ref.shape[0]
    iota = lax.broadcasted_iota(jnp.int32, (tile_m, v_pad), 1)
    # Disjoint vocab ranges after offsetting -> sum of one-hots is a valid
    # "three-hot"; one MXU matmul performs all three gathers + the two adds.
    three_hot = ((idx[:, 0:1] == iota).astype(jnp.float32)
                 + (idx[:, 1:2] == iota).astype(jnp.float32)
                 + (idx[:, 2:3] == iota).astype(jnp.float32))
    out_ref[...] = jnp.dot(three_hot, tbl_ref[...],
                           preferred_element_type=jnp.float32)


def graph_node_feature(x, node_attr, target_attr,
                       node_type_tbl, node_attr_tbl, target_tbl,
                       tile_m=512):
    """Pallas implementation of GraphNodeFeature.forward.

    x, node_attr, target_attr: (n_graph, n_node) integer tensors
    *_tbl: (vocab, hidden_dim) float32 embedding tables
    returns: (n_graph, n_node, hidden_dim) float32
    """
    B, N = x.shape
    V0, H = node_type_tbl.shape
    V1 = node_attr_tbl.shape[0]
    V2 = target_tbl.shape[0]
    M = B * N

    # ---- fused, padded table (tiny; built once per call) --------------------
    V_total = V0 + V1 + V2
    V_pad = _round_up(max(V_total, 128), 128)   # contraction dim / one-hot lanes
    H_pad = _round_up(max(H, 128), 128)         # lane-dense output width
    stacked_tbl = jnp.zeros((V_pad, H_pad), jnp.float32)
    stacked_tbl = stacked_tbl.at[:V0, :H].set(node_type_tbl.astype(jnp.float32))
    stacked_tbl = stacked_tbl.at[V0:V0 + V1, :H].set(node_attr_tbl.astype(jnp.float32))
    stacked_tbl = stacked_tbl.at[V0 + V1:V_total, :H].set(target_tbl.astype(jnp.float32))

    # ---- single packed, pre-offset index array: one DMA per grid step -------
    idx = jnp.stack(
        [x.reshape(M).astype(jnp.int32),
         node_attr.reshape(M).astype(jnp.int32) + V0,
         target_attr.reshape(M).astype(jnp.int32) + V0 + V1],
        axis=1)                                            # (M, 3) int32

    # ---- tile / pad the M axis ----------------------------------------------
    tm = min(tile_m, _round_up(M, 8))
    M_pad = _round_up(M, tm)
    if M_pad != M:
        # -1 never matches the iota -> padded rows produce all-zero output rows
        # which are sliced off below.
        idx = jnp.concatenate(
            [idx, jnp.full((M_pad - M, 3), -1, jnp.int32)], axis=0)

    grid = (M_pad // tm,)

    out = pl.pallas_call(
        graph_node_feature_kernel,
        out_shape=jax.ShapeDtypeStruct((M_pad, H_pad), jnp.float32),
        grid=grid,
        in_specs=[
            # per-step index tile (last dim == full array dim, so layout-legal)
            pl.BlockSpec((tm, 3), lambda i: (i, 0)),
            # stacked table: constant block index -> DMA'd once, stays resident
            pl.BlockSpec((V_pad, H_pad), lambda i: (0, 0)),
        ],
        out_specs=pl.BlockSpec((tm, H_pad), lambda i: (i, 0)),
        compiler_params=pltpu.CompilerParams(
            dimension_semantics=("parallel",),
            vmem_limit_bytes=32 * 1024 * 1024,
        ),
    )(idx, stacked_tbl)

    return out[:M, :H].reshape(B, N, H)


def init_embedding(key, vocab, hidden_dim, std=0.02):
    # Matches init_params: nn.Embedding weights ~ N(0, 0.02). init_params
    # overwrites the padding_idx=0 row too, so no zeroing is done.
    return (std * jax.random.normal(key, (vocab, hidden_dim))).astype(jnp.float32)


def _reference(x, node_attr, target_attr, t_tbl, a_tbl, g_tbl):
    return (jnp.take(t_tbl, x, axis=0)
            + jnp.take(a_tbl, node_attr, axis=0)
            + jnp.take(g_tbl, target_attr, axis=0))


if __name__ == "__main__":
    # Module hyperparameters (small, consistent with the PyTorch __init__).
    num_heads = 4
    num_node_type = 16
    num_node_attr = 16
    num_in_degree = 8     # in/out degree encoders exist in __init__ but are unused in forward
    num_out_degree = 8
    hidden_dim = 32
    n_layers = 2

    key = jax.random.PRNGKey(0)
    k1, k2, k3, k4, k5, k6, k7, k8, k9, k10, k11 = jax.random.split(key, 11)

    # Parameters (deterministic synthetic init).
    node_type_tbl = init_embedding(k1, num_node_type, hidden_dim)
    node_attr_tbl = init_embedding(k2, num_node_attr, hidden_dim)
    target_tbl = init_embedding(k3, 2, hidden_dim)
    _in_degree_tbl = init_embedding(k4, num_in_degree, hidden_dim)    # unused in forward
    _out_degree_tbl = init_embedding(k5, num_out_degree, hidden_dim)  # unused in forward

    # --- check 1: small shapes, single grid step -----------------------------
    n_graph, n_node = 2, 8
    x = jax.random.randint(k6, (n_graph, n_node), 0, num_node_type, dtype=jnp.int32)
    node_attr = jax.random.randint(k7, (n_graph, n_node), 0, num_node_attr, dtype=jnp.int32)
    target_attr = jax.random.randint(k8, (n_graph, n_node), 0, 2, dtype=jnp.int32)

    out = graph_node_feature(x, node_attr, target_attr,
                             node_type_tbl, node_attr_tbl, target_tbl)
    out = jax.block_until_ready(out)
    ref = _reference(x, node_attr, target_attr, node_type_tbl, node_attr_tbl, target_tbl)
    assert out.shape == (n_graph, n_node, hidden_dim)
    assert np.allclose(np.asarray(out), np.asarray(ref), atol=1e-5), "mismatch vs reference (small)"

    # --- check 2: multi-step grid + M padding path ----------------------------
    n_graph2, n_node2 = 2, 200   # M = 400 -> tile_m = 128 -> grid of 4, padded to 512 rows
    x2 = jax.random.randint(k9, (n_graph2, n_node2), 0, num_node_type, dtype=jnp.int32)
    node_attr2 = jax.random.randint(k10, (n_graph2, n_node2), 0, num_node_attr, dtype=jnp.int32)
    target_attr2 = jax.random.randint(k11, (n_graph2, n_node2), 0, 2, dtype=jnp.int32)

    out2 = graph_node_feature(x2, node_attr2, target_attr2,
                              node_type_tbl, node_attr_tbl, target_tbl, tile_m=128)
    out2 = jax.block_until_ready(out2)
    ref2 = _reference(x2, node_attr2, target_attr2, node_type_tbl, node_attr_tbl, target_tbl)
    assert out2.shape == (n_graph2, n_node2, hidden_dim)
    assert np.allclose(np.asarray(out2), np.asarray(ref2), atol=1e-5), "mismatch vs reference (gridded)"

    print("KERNEL_OK")
</pallas_src>

<mosaic_0001>
module attributes {stable_mosaic.version = 11 : i64} {
  func.func @graph_node_feature_kernel(%arg0: i32, %arg1: memref<16x3xi32, #tpu.memory_space<vmem>>, %arg2: memref<128x128xf32, #tpu.memory_space<vmem>>, %arg3: memref<16x128xf32, #tpu.memory_space<vmem>>) attributes {dimension_semantics = [#tpu.dimension_semantics<parallel>], iteration_bounds = array<i64: 1>, scalar_prefetch = 0 : i64, scratch_operands = 0 : i64, tpu.core_type = #tpu.core_type<tc>, window_params = [{transform_indices = @transform_0, window_bounds = array<i64: 16, 3>}, {pipeline_mode = #tpu.pipeline_mode<synchronous>, transform_indices = @transform_1, window_bounds = array<i64: 128, 128>}, {transform_indices = @transform_2, window_bounds = array<i64: 16, 128>}]} {
    %c0 = arith.constant 0 : index
    %c0_0 = arith.constant 0 : index
    %0 = vector.load %arg1[%c0, %c0_0] : memref<16x3xi32, #tpu.memory_space<vmem>>, vector<16x3xi32>
    %1 = tpu.iota {dimensions = array<i32: 1>} : vector<16x128xi32>
    %2 = vector.extract_strided_slice %0 {offsets = [0, 0], sizes = [16, 1], strides = [1, 1]} : vector<16x3xi32> to vector<16x1xi32>
    %3 = vector.broadcast %2 : vector<16x1xi32> to vector<16x128xi32>
    %4 = arith.cmpi eq, %3, %1 : vector<16x128xi32>
    %5 = arith.extui %4 : vector<16x128xi1> to vector<16x128xi32>
    %6 = arith.sitofp %5 : vector<16x128xi32> to vector<16x128xf32>
    %7 = vector.extract_strided_slice %0 {offsets = [0, 1], sizes = [16, 1], strides = [1, 1]} : vector<16x3xi32> to vector<16x1xi32>
    %8 = vector.broadcast %7 : vector<16x1xi32> to vector<16x128xi32>
    %9 = arith.cmpi eq, %8, %1 : vector<16x128xi32>
    %10 = arith.extui %9 : vector<16x128xi1> to vector<16x128xi32>
    %11 = arith.sitofp %10 : vector<16x128xi32> to vector<16x128xf32>
    %12 = arith.addf %6, %11 : vector<16x128xf32>
    %13 = vector.extract_strided_slice %0 {offsets = [0, 2], sizes = [16, 1], strides = [1, 1]} : vector<16x3xi32> to vector<16x1xi32>
    %14 = vector.broadcast %13 : vector<16x1xi32> to vector<16x128xi32>
    %15 = arith.cmpi eq, %14, %1 : vector<16x128xi32>
    %16 = arith.extui %15 : vector<16x128xi1> to vector<16x128xi32>
    %17 = arith.sitofp %16 : vector<16x128xi32> to vector<16x128xf32>
    %18 = arith.addf %12, %17 : vector<16x128xf32>
    %c0_1 = arith.constant 0 : index
    %c0_2 = arith.constant 0 : index
    %19 = vector.load %arg2[%c0_1, %c0_2] : memref<128x128xf32, #tpu.memory_space<vmem>>, vector<128x128xf32>
    %cst = arith.constant dense<0.000000e+00> : vector<16x128xf32>
    %20 = tpu.matmul %18, %19, %cst {dimension_numbers = #tpu.dot_dimension_numbers<[1], [0], [0], [1], [0, 0, 1, 1], [], []>} : vector<16x128xf32>, vector<128x128xf32>, vector<16x128xf32> -> vector<16x128xf32>
    %c0_3 = arith.constant 0 : index
    %c0_4 = arith.constant 0 : index
    %21 = vector.load %arg3[%c0_3, %c0_4] : memref<16x128xf32, #tpu.memory_space<vmem>>, vector<16x128xf32>
    tpu.vector_store %arg3[%c0_3, %c0_4], %20 {strides = array<i32>} : memref<16x128xf32, #tpu.memory_space<vmem>>, vector<16x128xf32>,
    return
  }
  func.func @transform_0(%arg0: i32) -> (i32, i32) {
    %c0_i32 = arith.constant 0 : i32
    %c0_i32_0 = arith.constant 0 : i32
    return %arg0, %c0_i32 : i32, i32
  }
  func.func @transform_1(%arg0: i32) -> (i32, i32) {
    %c0_i32 = arith.constant 0 : i32
    %c0_i32_0 = arith.constant 0 : i32
    %c0_i32_1 = arith.constant 0 : i32
    return %c0_i32, %c0_i32_0 : i32, i32
  }
  func.func @transform_2(%arg0: i32) -> (i32, i32) {
    %c0_i32 = arith.constant 0 : i32
    %c0_i32_0 = arith.constant 0 : i32
    return %arg0, %c0_i32 : i32, i32
  }
}

</mosaic_0001>

<bundles_post_ra>
// kernel: tpu_custom_call.1
= control target key start
LH: loop header
LB: loop body
LE: loop exit
PB: predicated region body
PF: predicated region fallthrough
CT: control target
= control target key end

     0   :  { %7 = vsyncpa [#allocation3], 0  ;;  %s392_s0 = inlined_call_operand.vmem [shape: s32[16,3], index: 0, kind: input, shape index: {}]   ;;  %s393_s1 = inlined_call_operand.hbm [shape: f32[128,128], index: 1, kind: input, shape index: {}]   ;;  %s394_s2 = inlined_call_operand.hbm [shape: f32[16,128], index: 2, kind: output, shape index: {}]  }
   0x1   :  { %8 = vsyncpa [#allocation4], 0  ;;  %s333_s9 = smov [#allocation2]   ;;  %s285_s13 = scalar_lea.hbm %s393_s1, 2048 }
   0x2   :  { %s16_s10 = sshll.u32 %s333_s9, 4  ;;  %p286_p0 = scmp.ne.s32.totalorder %s393_s1, %s285_s13  ;;  %s17_s10 = int_to_ptr.vmem [resolvable:$true] %s16_s10 }
   0x3   :  { %p289_p1 = scmp.lt.u32.totalorder %s285_s13, %s393_s1 }
   0x5   :  { %p291_p2 = pnand %p289_p1, %p286_p0 }
   0x7   :  { %294 = shalt.err (!%p291_p2)
}
   0x8   :  { %s295_s18 = scalar_lea.vmem %s17_s10, 2048  ;;  %p300_p4 = scmp.lt.s32.totalorder %s17_s10, %s17_s10 }
   0x9   :  { %p296_p3 = scmp.ne.s32.totalorder %s17_s10, %s295_s18  ;;  %p301_p5 = scmp.lt.s32.totalorder %s295_s18, %s295_s18 }
   0xb   :  { %p302_p6 = por %p301_p5, %p300_p4 }
   0xd   :  { %p303_p7 = pnand %p302_p6, %p296_p3 }
   0xf   :  { %306 = shalt.err (!%p303_p7)
}
  0x10   :  { %s334_s19 = smov 128   ;;  %s335_s20 = smov 8  }
  0x11   :  { %22 = dma.hbm_to_vmem [thread:$0]  %s393_s1, 2048, %s17_s10, [#allocation3], %s334_s19, %s334_s19, %s335_s20  }
  0x12   :  { %329 = dma.done.wait [#allocation3], 2048  }
  0x13   :  { %330 = vsyncadd [#allocation3], 4294965248  ;;  %v336_v0 = vmov 0   ;;  %v27_v1 = vld [vmem:[%s392_s0 + $0x8] sm:$0xff]  ;;  %v26_v2 = vld [vmem:[%s392_s0] sm:$0xff]  ;;  %v337_v9 = vmov 1   ;;  %v28_v29 = vlaneseq }
  0x14   :  { %281 = vset.pattern.permute.xlu1 %v336_v0  ;;  %279 = vset.pattern.permute.xlu0 %v336_v0  ;;  %v70_v3 = vld [vmem:[#allocation2] sm:$0xff]  ;;  %v71_v4 = vld [vmem:[#allocation2 + $0x8] sm:$0xff]  ;;  %v72_v5 = vld [vmem:[#allocation2 + $0x10] sm:$0xff]  ;;  %v338_v13 = vmov 2   ;;  %v339_v35 = vmov 0.0   ;;  %s340_s0 = smov [#allocation5]  }
  0x15   :  { %34 = vperm.xlu1 %281, %v27_v1   ;;  %31 = vperm.xlu0 %279, %v26_v2   ;;  %v73_v6 = vld [vmem:[#allocation2 + $0x18] sm:$0xff]  ;;  %v239_v7 = vpack.c.bf16 %v71_v4, %v70_v3  ;;  %v74_v10 = vld [vmem:[#allocation2 + $0x20] sm:$0xff]  ;;  %v75_v11 = vld [vmem:[#allocation2 + $0x28] sm:$0xff]  ;;  %v29_v32 = vand.u32 127, %v28_v29  ;;  %s168_s1 = sshll.u32 %s340_s0, 4  ;;  %s169_s1 = int_to_ptr.vmem [resolvable:$true] %s168_s1 }
  0x16   :  { %v243_v8 = vpack.c.bf16 %v73_v6, %v72_v5  ;;  %v247_v12 = vpack.c.bf16 %v75_v11, %v74_v10  ;;  %v76_v14 = vld [vmem:[#allocation2 + $0x30] sm:$0xff]  ;;  %v77_v15 = vld [vmem:[#allocation2 + $0x38] sm:$0xff]  ;;  %v78_v17 = vld [vmem:[#allocation2 + $0x40] sm:$0xff]  ;;  %s307_s27 = scalar_lea.vmem %s169_s1, 256  ;;  %p312_p9 = scmp.lt.s32.totalorder %s169_s1, %s169_s1 }
  0x17   :  { %240 = vmatprep.subr.bf16.mxu0 %v239_v7  ;;  %v251_v16 = vpack.c.bf16 %v77_v15, %v76_v14  ;;  %v79_v18 = vld [vmem:[#allocation2 + $0x48] sm:$0xff]  ;;  %v80_v20 = vld [vmem:[#allocation2 + $0x50] sm:$0xff]  ;;  %v81_v21 = vld [vmem:[#allocation2 + $0x58] sm:$0xff]  ;;  %p308_p8 = scmp.ne.s32.totalorder %s169_s1, %s307_s27  ;;  %p313_p10 = scmp.lt.s32.totalorder %s307_s27, %s307_s27 }
  0x18   :  { %242 = vmatpush3.bf16.msra.mxu0 %v239_v7  ;;  %v255_v19 = vpack.c.bf16 %v79_v18, %v78_v17  ;;  %v259_v22 = vpack.c.bf16 %v81_v21, %v80_v20  ;;  %v82_v23 = vld [vmem:[#allocation2 + $0x60] sm:$0xff]  ;;  %v83_v24 = vld [vmem:[#allocation2 + $0x68] sm:$0xff]  ;;  %v84_v26 = vld [vmem:[#allocation2 + $0x70] sm:$0xff] }
  0x19   :  { %282 = vset.pattern.permute.xlu1 %v337_v9  ;;  %280 = vset.pattern.permute.xlu0 %v337_v9  ;;  %v263_v25 = vpack.c.bf16 %v83_v24, %v82_v23  ;;  %v85_v27 = vld [vmem:[#allocation2 + $0x78] sm:$0xff]  ;;  %p314_p11 = por %p313_p10, %p312_p9 }
  0x1a   :  { %46 = vperm.xlu1 %282, %v27_v1   ;;  %43 = vperm.xlu0 %280, %v26_v2   ;;  %v267_v28 = vpack.c.bf16 %v85_v27, %v84_v26 }
  0x1b   :  { %244 = vmatprep.subr.bf16.mxu0 %v243_v8  ;;  %p315_p12 = pnand %p314_p11, %p308_p8 }
  0x1c   :  { %246 = vmatpush3.bf16.msra.mxu0 %v243_v8 }
  0x1d   :  { %248 = vmatprep.subr.bf16.mxu0 %v247_v12 }
  0x1e   :  { %283 = vset.pattern.permute.xlu1 %v338_v13  ;;  %284 = vset.pattern.permute.xlu0 %v338_v13 }
  0x1f   :  { %57 = vperm.xlu1 %283, %v26_v2   ;;  %60 = vperm.xlu0 %284, %v27_v1  }
  0x20   :  { %250 = vmatpush3.bf16.msra.mxu0 %v247_v12 }
  0x21   :  { %252 = vmatprep.subr.bf16.mxu0 %v251_v16 }
  0x24   :  { %254 = vmatpush3.bf16.msra.mxu0 %v251_v16 }
  0x25   :  { %256 = vmatprep.subr.bf16.mxu0 %v255_v19 }
  0x28   :  { %258 = vmatpush3.bf16.msra.mxu0 %v255_v19 }
  0x29   :  { %260 = vmatprep.subr.bf16.mxu0 %v259_v22 }
  0x2c   :  { %262 = vmatpush3.bf16.msra.mxu0 %v259_v22 }
  0x2d   :  { %264 = vmatprep.subr.bf16.mxu0 %v263_v25 }
  0x30   :  { %266 = vmatpush3.bf16.msra.mxu0 %v263_v25 }
  0x31   :  { %268 = vmatprep.subr.bf16.mxu0 %v267_v28 }
  0x34   :  { %270 = vmatpush3.bf16.msra.mxu0 %v267_v28 }
  0x94   :  { %v35_v30 = vpop.permute.xlu1 %34  ;;  %v32_v31 = vpop.permute.xlu0 %31 }
  0x95   :  { %vm37_vm2 = vcmp.eq.s32.totalorder %v35_v30, %v29_v32  ;;  %vm36_vm3 = vcmp.eq.s32.totalorder %v32_v31, %v29_v32 }
  0x96   :  { %v181_v38 = vsel %vm37_vm2, 1.0, %v339_v35  ;;  %v180_v39 = vsel %vm36_vm3, 1.0, %v339_v35 }
  0x99   :  { %v47_v33 = vpop.permute.xlu1 %46  ;;  %v44_v34 = vpop.permute.xlu0 %43 }
  0x9a   :  { %vm49_vm0 = vcmp.eq.s32.totalorder %v47_v33, %v29_v32  ;;  %vm48_vm1 = vcmp.eq.s32.totalorder %v44_v34, %v29_v32 }
  0x9b   :  { %v183_v36 = vsel %vm49_vm0, 1.0, %v339_v35  ;;  %v182_v37 = vsel %vm48_vm1, 1.0, %v339_v35 }
  0x9c   :  { %v55_v42 = vadd.f32 %v183_v36, %v181_v38  ;;  %v54_v43 = vadd.f32 %v182_v37, %v180_v39 }
  0x9e   :  { %v58_v40 = vpop.permute.xlu1 %57  ;;  %v61_v41 = vpop.permute.xlu0 %60 }
  0x9f   :  { %vm62_vm4 = vcmp.eq.s32.totalorder %v58_v40, %v29_v32  ;;  %vm63_vm5 = vcmp.eq.s32.totalorder %v61_v41, %v29_v32 }
  0xa0   :  { %v185_v44 = vsel %vm63_vm5, 1.0, %v339_v35  ;;  %v184_v45 = vsel %vm62_vm4, 1.0, %v339_v35 }
  0xa1   :  { %v69_v46 = vadd.f32 %v185_v44, %v55_v42  ;;  %v68_v47 = vadd.f32 %v184_v45, %v54_v43 }
  0xa3   :  { %236 = vmatprep.mubr.f32.mxu0 %v68_v47 }
  0xa4   :  { %237 = vmatmul.mubr.f32.vlgmr.msra.gmra.mrb[0].mxu0 %v69_v46 }
 0x177   :  { %v238_v48 = vpop.f32.mrb[0].mxu0 }
 0x178   :  { %162 = vst [vmem:[#allocation5 + $0x8] sm:$0xff] %v238_v48  ;;  %v152_v49 = vpop.f32.mrb[1].mxu0 }
 0x179   :  { %161 = vst [vmem:[#allocation5] sm:$0xff] %v152_v49 }
 0x17a   :  { %318 = shalt.err (!%p315_p12)
}
 0x17b   :  { %s319_s30 = scalar_lea.hbm %s394_s2, 256 }
 0x17c   :  { %p320_p13 = scmp.ne.s32.totalorder %s394_s2, %s319_s30  ;;  %p323_p0 = scmp.lt.u32.totalorder %s319_s30, %s394_s2 }
 0x17e   :  { %p325_p1 = pnand %p323_p0, %p320_p13 }
 0x180   :  { %328 = shalt.err (!%p325_p1)
}
 0x181   :  { %174 = dma.vmem_to_hbm [thread:$0]  %s169_s1, 256, %s394_s2, [#allocation4], %s334_s19, %s334_s19, %s335_s20  }
 0x182   :  { %331 = dma.done.wait [#allocation4], 256  }
 0x183   :  { %332 = vsyncadd [#allocation4], 4294967040 }
 0x184   :  { %178 = vsyncpa [#allocation3], 1 }
 0x185   :  { %179 = vsyncpa [#allocation4], 1 }

</bundles_post_ra>
